<compile_context>
chip_gen: v5e
topology: v5e:2x2
jax: 0.10.0
libtpu: 0.0.40
codegen_flags: <defaults>
</compile_context>

<pallas_src>
import jax
import jax.numpy as jnp
from jax.experimental import pallas as pl
from jax.experimental.pallas import tpu as pltpu

DIN = 2
H_PAD = 64  # hidden width 50 padded up to a sublane-aligned 64


def _mlp_kernel(x_ref, w1_ref, b1_ref, w2_ref, b2_ref, w3_ref, b3_ref, o_ref):
    # Transposed layout: activations are (features, tile_n); batch on lanes.
    x = x_ref[...]                       # (2, tile_n) f32
    w1 = w1_ref[...]                     # (H_PAD, 2) f32

    # fc1: contraction depth is only 2 -> two broadcast FMAs on the VPU (f32)
    # instead of a K=2 MXU matmul.
    h1 = (w1[:, 0:1] * x[0:1, :] + w1[:, 1:2] * x[1:2, :]) + b1_ref[...]
    h1 = jnp.maximum(h1, 0.0)            # (H_PAD, tile_n) f32

    # fc2: the only real matmul (64 x 64 x tile_n) -> MXU.  bf16 operands
    # (packed vregs, single-pass MXU) with f32 accumulation.
    h2 = jnp.dot(
        w2_ref[...].astype(jnp.bfloat16),
        h1.astype(jnp.bfloat16),
        preferred_element_type=jnp.float32,
    ) + b2_ref[...]
    h2 = jnp.maximum(h2, 0.0)            # (H_PAD, tile_n) f32

    # fc3: single output feature -> multiply + sublane reduction (XLU) plus a
    # scalar bias read from SMEM; the (1, tile_n) result is a lane-dense store.
    y = jnp.sum(w3_ref[...] * h2, axis=0, keepdims=True) + b3_ref[0, 0]
    o_ref[...] = y.astype(o_ref.dtype)


def _num_tensorcores():
    """2 on v7x (two TensorCores per chip), 1 on v5e/v6e (and on fallback)."""
    try:
        kind = jax.devices()[0].device_kind.lower()
        if "v7" in kind:
            return 2
    except Exception:  # pragma: no cover - defensive: unknown backends
        pass
    return 1


def pde_net_forward_t(xt, params, *, tile_n):
    """Fast path: xt is (2, n_pad) f32 with n_pad % tile_n == 0 and
    tile_n % 128 == 0.  Returns (1, n_pad) f32 (padded columns included).
    Use this directly inside a training loop to avoid the pad/transpose/slice
    HLO ops of the convenience wrapper below."""
    w1, b1, w2, b2, w3, b3 = params
    n_pad = xt.shape[1]
    assert n_pad % tile_n == 0 and tile_n % 128 == 0

    grid = (n_pad // tile_n,)
    in_specs = [
        pl.BlockSpec((DIN, tile_n), lambda i: (0, i)),      # x (tiled on lanes)
        pl.BlockSpec((H_PAD, DIN), lambda i: (0, 0)),       # w1
        pl.BlockSpec((H_PAD, 1), lambda i: (0, 0)),         # b1
        pl.BlockSpec((H_PAD, H_PAD), lambda i: (0, 0)),     # w2
        pl.BlockSpec((H_PAD, 1), lambda i: (0, 0)),         # b2
        pl.BlockSpec((H_PAD, 1), lambda i: (0, 0)),         # w3 (as a column)
        pl.BlockSpec(memory_space=pltpu.MemorySpace.SMEM),  # b3 scalar in SMEM
    ]
    out_spec = pl.BlockSpec((1, tile_n), lambda i: (0, i))  # lane-dense output

    # Scheduler hint for when this is embedded in a larger PINN graph.
    flops = 2 * (DIN * H_PAD + H_PAD * H_PAD + H_PAD) * n_pad
    param_bytes = 4 * (H_PAD * DIN + H_PAD + H_PAD * H_PAD + H_PAD + H_PAD + 1)
    cost = pl.CostEstimate(
        flops=flops,
        transcendentals=0,
        bytes_accessed=4 * (DIN + 1) * n_pad + param_bytes,
    )

    return pl.pallas_call(
        _mlp_kernel,
        out_shape=jax.ShapeDtypeStruct((1, n_pad), jnp.float32),
        grid_spec=pltpu.PrefetchScalarGridSpec(
            num_scalar_prefetch=0,
            grid=grid,
            in_specs=in_specs,
            out_specs=out_spec,
        ),
        compiler_params=pltpu.CompilerParams(
            dimension_semantics=("parallel",),
        ),
        cost_estimate=cost,
    )(xt, w1, b1, w2, b2, w3, b3)


def pde_net_forward(x, params, *, tile_n=None):
    """x: (N, 2) float32 collocation points. Returns (N, 1) float32."""
    N, din = x.shape
    assert din == DIN

    if tile_n is None:
        # One tile per TensorCore when the whole batch fits: single grid step
        # on single-TC v5e/v6e (no per-step overhead for nothing), >=2
        # "parallel" steps on 2-TC v7x.  Cap at 4096 (~3 MB/tile of f32
        # intermediates) so even v5e's 16 MiB default scoped VMEM is safe.
        ntc = _num_tensorcores()
        tile_n = min(4096, max(128, pl.cdiv(N, ntc * 128) * 128))
    n_pad = pl.cdiv(N, tile_n) * tile_n

    x_p = jnp.pad(x.astype(jnp.float32), ((0, n_pad - N), (0, 0)))
    out_t = pde_net_forward_t(x_p.T, params, tile_n=tile_n)
    return out_t[:, :N].T                # (N, 1)


def init_params(key):
    """torch.nn.Linear-style init (U[-1/sqrt(fan_in), +]), stored transposed
    (out_features, in_features) and zero-padded from width 50 to H_PAD=64."""
    H = 50
    keys = jax.random.split(key, 6)

    def unif(k, shape, fan_in):
        bound = 1.0 / (fan_in ** 0.5)
        return jax.random.uniform(k, shape, jnp.float32, -bound, bound)

    w1 = jnp.zeros((H_PAD, 2), jnp.float32).at[:H, :].set(unif(keys[0], (H, 2), 2))
    b1 = jnp.zeros((H_PAD, 1), jnp.float32).at[:H, :].set(unif(keys[1], (H, 1), 2))
    w2 = jnp.zeros((H_PAD, H_PAD), jnp.float32).at[:H, :H].set(unif(keys[2], (H, H), H))
    b2 = jnp.zeros((H_PAD, 1), jnp.float32).at[:H, :].set(unif(keys[3], (H, 1), H))
    w3 = jnp.zeros((H_PAD, 1), jnp.float32).at[:H, :].set(unif(keys[4], (H, 1), H))
    b3 = unif(keys[5], (1, 1), H)
    return (w1, b1, w2, b2, w3, b3)


def pde_net_reference(x, params, *, bf16_fc2=False):
    """Pure-JAX reference in the standard (batch, features) layout."""
    w1, b1, w2, b2, w3, b3 = params
    h1 = jnp.maximum(x @ w1.T + b1.T, 0.0)
    if bf16_fc2:
        z2 = jnp.dot(h1.astype(jnp.bfloat16), w2.T.astype(jnp.bfloat16),
                     preferred_element_type=jnp.float32) + b2.T
    else:
        z2 = h1 @ w2.T + b2.T
    h2 = jnp.maximum(z2, 0.0)
    return h2 @ w3 + b3


if __name__ == "__main__":
    key = jax.random.PRNGKey(0)
    kp, kx = jax.random.split(key)
    params = init_params(kp)

    # Batch of (t, x) collocation points, shape (N, 2).
    N = 512
    x = jax.random.normal(kx, (N, 2), dtype=jnp.float32)

    out = jax.block_until_ready(pde_net_forward(x, params))
    assert out.shape == (N, 1)
    # Tight check vs. a reference that mirrors the bf16 fc2 dot.
    ref_bf16 = pde_net_reference(x, params, bf16_fc2=True)
    assert jnp.allclose(out, ref_bf16, atol=1e-3, rtol=1e-3), "mismatch (bf16-matched ref)"
    # Loose check vs. the full-f32 reference (bf16 fc2 rounding).
    ref_f32 = pde_net_reference(x, params)
    assert jnp.allclose(out, ref_f32, atol=5e-2, rtol=5e-2), "mismatch (f32 ref)"

    # Ragged batch size exercises the padding / output-slice path.
    x2 = jax.random.normal(jax.random.PRNGKey(1), (200, 2), dtype=jnp.float32)
    out2 = jax.block_until_ready(pde_net_forward(x2, params))
    assert out2.shape == (200, 1)
    ref2 = pde_net_reference(x2, params, bf16_fc2=True)
    assert jnp.allclose(out2, ref2, atol=1e-3, rtol=1e-3), "mismatch (padded batch)"

    print("KERNEL_OK")
</pallas_src>

<mosaic_0001>
module attributes {stable_mosaic.version = 11 : i64} {
  func.func @_mlp_kernel(%arg0: i32, %arg1: memref<2x512xf32, #tpu.memory_space<vmem>>, %arg2: memref<64x2xf32, #tpu.memory_space<vmem>>, %arg3: memref<64x1xf32, #tpu.memory_space<vmem>>, %arg4: memref<64x64xf32, #tpu.memory_space<vmem>>, %arg5: memref<64x1xf32, #tpu.memory_space<vmem>>, %arg6: memref<64x1xf32, #tpu.memory_space<vmem>>, %arg7: memref<1x1xf32, #tpu.memory_space<smem>>, %arg8: memref<1x512xf32, #tpu.memory_space<vmem>>) attributes {dimension_semantics = [#tpu.dimension_semantics<parallel>], iteration_bounds = array<i64: 1>, scalar_prefetch = 0 : i64, scratch_operands = 0 : i64, tpu.core_type = #tpu.core_type<tc>, window_params = [{transform_indices = @transform_0, window_bounds = array<i64: 2, 512>}, {pipeline_mode = #tpu.pipeline_mode<synchronous>, transform_indices = @transform_1, window_bounds = array<i64: 64, 2>}, {pipeline_mode = #tpu.pipeline_mode<synchronous>, transform_indices = @transform_2, window_bounds = array<i64: 64, 1>}, {pipeline_mode = #tpu.pipeline_mode<synchronous>, transform_indices = @transform_3, window_bounds = array<i64: 64, 64>}, {pipeline_mode = #tpu.pipeline_mode<synchronous>, transform_indices = @transform_4, window_bounds = array<i64: 64, 1>}, {pipeline_mode = #tpu.pipeline_mode<synchronous>, transform_indices = @transform_5, window_bounds = array<i64: 64, 1>}, {transform_indices = @transform_6, window_bounds = array<i64: 1, 1>}, {transform_indices = @transform_7, window_bounds = array<i64: 1, 512>}]} {
    %c0 = arith.constant 0 : index
    %c0_0 = arith.constant 0 : index
    %0 = vector.load %arg1[%c0, %c0_0] : memref<2x512xf32, #tpu.memory_space<vmem>>, vector<2x512xf32>
    %c0_1 = arith.constant 0 : index
    %c0_2 = arith.constant 0 : index
    %1 = vector.load %arg2[%c0_1, %c0_2] : memref<64x2xf32, #tpu.memory_space<vmem>>, vector<64x2xf32>
    %2 = vector.extract_strided_slice %1 {offsets = [0, 0], sizes = [64, 1], strides = [1, 1]} : vector<64x2xf32> to vector<64x1xf32>
    %3 = vector.extract_strided_slice %0 {offsets = [0, 0], sizes = [1, 512], strides = [1, 1]} : vector<2x512xf32> to vector<1x512xf32>
    %4 = vector.broadcast %2 : vector<64x1xf32> to vector<64x512xf32>
    %5 = vector.broadcast %3 : vector<1x512xf32> to vector<64x512xf32>
    %6 = arith.mulf %4, %5 : vector<64x512xf32>
    %7 = vector.extract_strided_slice %1 {offsets = [0, 1], sizes = [64, 1], strides = [1, 1]} : vector<64x2xf32> to vector<64x1xf32>
    %8 = vector.extract_strided_slice %0 {offsets = [1, 0], sizes = [1, 512], strides = [1, 1]} : vector<2x512xf32> to vector<1x512xf32>
    %9 = vector.broadcast %7 : vector<64x1xf32> to vector<64x512xf32>
    %10 = vector.broadcast %8 : vector<1x512xf32> to vector<64x512xf32>
    %11 = arith.mulf %9, %10 : vector<64x512xf32>
    %12 = arith.addf %6, %11 : vector<64x512xf32>
    %c0_3 = arith.constant 0 : index
    %c0_4 = arith.constant 0 : index
    %13 = vector.load %arg3[%c0_3, %c0_4] : memref<64x1xf32, #tpu.memory_space<vmem>>, vector<64x1xf32>
    %14 = vector.broadcast %13 : vector<64x1xf32> to vector<64x512xf32>
    %15 = arith.addf %12, %14 : vector<64x512xf32>
    %cst = arith.constant 0.000000e+00 : f32
    %16 = vector.broadcast %cst : f32 to vector<64x512xf32>
    %17 = arith.maximumf %15, %16 : vector<64x512xf32>
    %c0_5 = arith.constant 0 : index
    %c0_6 = arith.constant 0 : index
    %18 = vector.load %arg4[%c0_5, %c0_6] : memref<64x64xf32, #tpu.memory_space<vmem>>, vector<64x64xf32>
    %19 = arith.truncf %18 : vector<64x64xf32> to vector<64x64xbf16>
    %20 = arith.truncf %17 : vector<64x512xf32> to vector<64x512xbf16>
    %cst_7 = arith.constant dense<0.000000e+00> : vector<64x512xf32>
    %21 = tpu.matmul %19, %20, %cst_7 {dimension_numbers = #tpu.dot_dimension_numbers<[1], [0], [0], [1], [0, 0, 1, 1], [], []>} : vector<64x64xbf16>, vector<64x512xbf16>, vector<64x512xf32> -> vector<64x512xf32>
    %c0_8 = arith.constant 0 : index
    %c0_9 = arith.constant 0 : index
    %22 = vector.load %arg5[%c0_8, %c0_9] : memref<64x1xf32, #tpu.memory_space<vmem>>, vector<64x1xf32>
    %23 = vector.broadcast %22 : vector<64x1xf32> to vector<64x512xf32>
    %24 = arith.addf %21, %23 : vector<64x512xf32>
    %cst_10 = arith.constant 0.000000e+00 : f32
    %25 = vector.broadcast %cst_10 : f32 to vector<64x512xf32>
    %26 = arith.maximumf %24, %25 : vector<64x512xf32>
    %c0_11 = arith.constant 0 : index
    %c0_12 = arith.constant 0 : index
    %27 = vector.load %arg6[%c0_11, %c0_12] : memref<64x1xf32, #tpu.memory_space<vmem>>, vector<64x1xf32>
    %28 = vector.broadcast %27 : vector<64x1xf32> to vector<64x512xf32>
    %29 = arith.mulf %28, %26 : vector<64x512xf32>
    %cst_13 = arith.constant dense<0.000000e+00> : vector<512xf32>
    %30 = vector.multi_reduction <add>, %29, %cst_13 [0] : vector<64x512xf32> to vector<512xf32>
    %31 = vector.shape_cast %30 : vector<512xf32> to vector<1x512xf32>
    %c0_14 = arith.constant 0 : index
    %c0_15 = arith.constant 0 : index
    %32 = memref.load %arg7[%c0_14, %c0_15] : memref<1x1xf32, #tpu.memory_space<smem>>
    %33 = vector.broadcast %32 : f32 to vector<1x512xf32>
    %34 = arith.addf %31, %33 : vector<1x512xf32>
    %c0_16 = arith.constant 0 : index
    %c0_17 = arith.constant 0 : index
    %35 = vector.load %arg8[%c0_16, %c0_17] : memref<1x512xf32, #tpu.memory_space<vmem>>, vector<1x512xf32>
    tpu.vector_store %arg8[%c0_16, %c0_17], %34 {strides = array<i32>} : memref<1x512xf32, #tpu.memory_space<vmem>>, vector<1x512xf32>,
    return
  }
  func.func @transform_0(%arg0: i32) -> (i32, i32) {
    %c0_i32 = arith.constant 0 : i32
    %c0_i32_0 = arith.constant 0 : i32
    return %c0_i32, %arg0 : i32, i32
  }
  func.func @transform_1(%arg0: i32) -> (i32, i32) {
    %c0_i32 = arith.constant 0 : i32
    %c0_i32_0 = arith.constant 0 : i32
    %c0_i32_1 = arith.constant 0 : i32
    return %c0_i32, %c0_i32_0 : i32, i32
  }
  func.func @transform_2(%arg0: i32) -> (i32, i32) {
    %c0_i32 = arith.constant 0 : i32
    %c0_i32_0 = arith.constant 0 : i32
    %c0_i32_1 = arith.constant 0 : i32
    return %c0_i32, %c0_i32_0 : i32, i32
  }
  func.func @transform_3(%arg0: i32) -> (i32, i32) {
    %c0_i32 = arith.constant 0 : i32
    %c0_i32_0 = arith.constant 0 : i32
    %c0_i32_1 = arith.constant 0 : i32
    return %c0_i32, %c0_i32_0 : i32, i32
  }
  func.func @transform_4(%arg0: i32) -> (i32, i32) {
    %c0_i32 = arith.constant 0 : i32
    %c0_i32_0 = arith.constant 0 : i32
    %c0_i32_1 = arith.constant 0 : i32
    return %c0_i32, %c0_i32_0 : i32, i32
  }
  func.func @transform_5(%arg0: i32) -> (i32, i32) {
    %c0_i32 = arith.constant 0 : i32
    %c0_i32_0 = arith.constant 0 : i32
    %c0_i32_1 = arith.constant 0 : i32
    return %c0_i32, %c0_i32_0 : i32, i32
  }
  func.func @transform_6(%arg0: i32) -> (i32, i32) {
    %c0_i32 = arith.constant 0 : i32
    %c0_i32_0 = arith.constant 0 : i32
    %c0_i32_1 = arith.constant 0 : i32
    return %c0_i32, %c0_i32_0 : i32, i32
  }
  func.func @transform_7(%arg0: i32) -> (i32, i32) {
    %c0_i32 = arith.constant 0 : i32
    %c0_i32_0 = arith.constant 0 : i32
    return %c0_i32, %arg0 : i32, i32
  }
}

</mosaic_0001>

<bundles_post_ra>
// kernel: tpu_custom_call.1
= control target key start
LH: loop header
LB: loop body
LE: loop exit
PB: predicated region body
PF: predicated region fallthrough
CT: control target
= control target key end

     0   :  { %v810_v2 = vmov 1   ;;  %v811_v3 = vmov 0   ;;  %s1156_s0 = inlined_call_operand.vmem [shape: f32[2,512], index: 0, kind: input, shape index: {}]   ;;  %s1157_s1 = inlined_call_operand.vmem [shape: f32[64,2], index: 1, kind: input, shape index: {}]   ;;  %s1158_s2 = inlined_call_operand.vmem [shape: f32[64,1], index: 2, kind: input, shape index: {}]   ;;  %s1159_s3 = inlined_call_operand.vmem [shape: f32[64,64], index: 3, kind: input, shape index: {}]   ;;  %s1160_s4 = inlined_call_operand.vmem [shape: f32[64,1], index: 4, kind: input, shape index: {}]   ;;  %s1161_s5 = inlined_call_operand.vmem [shape: f32[64,1], index: 5, kind: input, shape index: {}]   ;;  %s1162_s6 = inlined_call_operand.<no memory space> [shape: f32[1,1], index: 6, kind: input, shape index: {}]   ;;  %s1163_s7 = inlined_call_operand.hbm [shape: f32[1,512], index: 7, kind: output, shape index: {}]  }
   0x1   :  { %v36_v0 = vld [vmem:[%s1157_s1 + $0x30] sm:$0xff]  ;;  %v34_v1 = vld [vmem:[%s1157_s1 + $0x20] sm:$0xff]  ;;  %773 = vset.pattern.permute.xlu1 %v810_v2  ;;  %774 = vset.pattern.permute.xlu2 %v811_v3 }
   0x2   :  { %772 = vset.pattern.permute.xlu0 %v811_v3  ;;  %148 = vperm.xlu1 %773, %v36_v0  }
   0x3   :  { %70 = vperm.xlu0 %772, %v36_v0   ;;  %60 = vperm.xlu2 %774, %v34_v1  }
   0x4   :  { %13 = vsyncpa [#allocation4], 0  ;;  %v37_v4 = vld [vmem:[%s1157_s1 + $0x38] sm:$0xff]  ;;  %v35_v5 = vld [vmem:[%s1157_s1 + $0x28] sm:$0xff]  ;;  %vm419_vm0 = vcmask 523264   ;;  %vm725_vm1 = vcmask 1040384  }
   0x5   :  { %v237_v6 = vld [vmem:[%s1158_s2 + $0x30] sm:$0xff]  ;;  %v33_v7 = vld [vmem:[%s1157_s1 + $0x18] sm:$0xff]  ;;  %v30_v9 = vld [vmem:[%s1157_s1] sm:$0xff]  ;;  %vm727_vm2 = vcmask 1042434   ;;  %s812_s30 = smov [#allocation3]   ;;  %vm729_vm3 = vcmask 1041408  }
   0x6   :  { %v32_v8 = vld [vmem:[%s1157_s1 + $0x10] sm:$0xff]  ;;  %v238_v10 = vld [vmem:[%s1158_s2 + $0x38] sm:$0xff]  ;;  %v236_v11 = vld [vmem:[%s1158_s2 + $0x28] sm:$0xff] }
   0x7   :  { %v235_v12 = vld [vmem:[%s1158_s2 + $0x20] sm:$0xff]  ;;  %v31_v13 = vld [vmem:[%s1157_s1 + $0x8] sm:$0xff]  ;;  %v233_v14 = vld [vmem:[%s1158_s2 + $0x10] sm:$0xff] }
   0x8   :  { %v234_v15 = vld [vmem:[%s1158_s2 + $0x18] sm:$0xff]  ;;  %v231_v16 = vld [vmem:[%s1158_s2] sm:$0xff]  ;;  %v232_v17 = vld [vmem:[%s1158_s2 + $0x8] sm:$0xff] }
   0x9   :  { %v372_v18 = vld [vmem:[%s1160_s4 + $0x8] sm:$0xff]  ;;  %v373_v19 = vld [vmem:[%s1160_s4 + $0x10] sm:$0xff]  ;;  %v374_v20 = vld [vmem:[%s1160_s4 + $0x18] sm:$0xff] }
   0xa   :  { %152 = vperm.xlu1 %773, %v37_v4   ;;  %v580_v21 = vld [vmem:[%s1161_s5] sm:$0xff]  ;;  %v582_v23 = vld [vmem:[%s1161_s5 + $0x10] sm:$0xff]  ;;  %v583_v24 = vld [vmem:[%s1161_s5 + $0x18] sm:$0xff] }
   0xb   :  { %75 = vperm.xlu0 %772, %v37_v4   ;;  %65 = vperm.xlu2 %774, %v35_v5   ;;  %v375_v22 = vld [vmem:[%s1160_s4 + $0x20] sm:$0xff]  ;;  %v377_v25 = vld [vmem:[%s1160_s4 + $0x30] sm:$0xff]  ;;  %v378_v27 = vld [vmem:[%s1160_s4 + $0x38] sm:$0xff] }
   0xc   :  { %v585_v28 = vld [vmem:[%s1161_s5 + $0x28] sm:$0xff]  ;;  %v587_v30 = vld [vmem:[%s1161_s5 + $0x38] sm:$0xff]  ;;  %v29_v33 = vld [vmem:[%s1156_s0] sm:$0xff]  ;;  %s742_s0 = sshll.u32 %s812_s30, 4  ;;  %s743_s0 = int_to_ptr.vmem [resolvable:$true] %s742_s0 }
   0xd   :  { %v155_v35 = vperm.slane %v29_v33, 1  ;;  %v156_v36 = vperm.slane %v29_v33, 3  ;;  %v157_v37 = vperm.slane %v29_v33, 5  ;;  %v158_v38 = vperm.slane %v29_v33, 7 }
   0xe   :  { %v79_v39 = vperm.slane %v29_v33, 0  ;;  %v80_v40 = vperm.slane %v29_v33, 2  ;;  %v81_v41 = vperm.slane %v29_v33, 4  ;;  %v82_v42 = vperm.slane %v29_v33, 6 }
   0xf   :  { %v941_v45 = vperm.slane %v155_v35, 1  ;;  %v943_v46 = vperm.slane %v156_v36, 1  ;;  %v945_v47 = vperm.slane %v157_v37, 1  ;;  %v947_v48 = vperm.slane %v158_v38, 1 }
  0x10   :  { %v949_v49 = vperm.slane %v79_v39, 0  ;;  %v951_v50 = vperm.slane %v80_v40, 0  ;;  %v953_v51 = vperm.slane %v81_v41, 0  ;;  %v955_v52 = vperm.slane %v82_v42, 0 }
  0x12   :  { %144 = vperm.xlu1 %773, %v35_v5  }
  0x13   :  { %271 = vperm.xlu2 %774, %v237_v6   ;;  %55 = vperm.xlu0 %772, %v33_v7  }
  0x1a   :  { %775 = vset.pattern.permute.xlu1 %v811_v3 }
  0x1b   :  { %50 = vperm.xlu2 %774, %v32_v8   ;;  %40 = vperm.xlu0 %772, %v30_v9  }
  0x1c   :  { %276 = vperm.xlu1 %775, %v238_v10  }
  0x23   :  { %777 = vset.pattern.permute.xlu2 %v810_v2  ;;  %780 = vset.pattern.permute.xlu0 %v810_v2 }
  0x24   :  { %776 = vset.pattern.permute.xlu1 %v810_v2  ;;  %136 = vperm.xlu2 %777, %v33_v7  }
  0x25   :  { %140 = vperm.xlu0 %780, %v34_v1   ;;  %132 = vperm.xlu1 %776, %v32_v8  }
  0x2c   :  { %779 = vset.pattern.permute.xlu2 %v811_v3 }
  0x2d   :  { %778 = vset.pattern.permute.xlu1 %v811_v3  ;;  %266 = vperm.xlu2 %779, %v236_v11  }
  0x2e   :  { %261 = vperm.xlu1 %778, %v235_v12   ;;  %128 = vperm.xlu0 %780, %v31_v13  }
  0x35   :  { %781 = vset.pattern.permute.xlu2 %v810_v2 }
  0x36   :  { %45 = vperm.xlu1 %778, %v31_v13   ;;  %124 = vperm.xlu2 %781, %v30_v9  }
  0x37   :  { %783 = vset.pattern.permute.xlu0 %v811_v3 }
  0x3e   :  { %251 = vperm.xlu1 %778, %v233_v14   ;;  %782 = vset.pattern.permute.xlu2 %v811_v3 }
  0x3f   :  { %256 = vperm.xlu2 %782, %v234_v15  }
  0x46   :  { %241 = vperm.xlu1 %778, %v231_v16  }
  0x47   :  { %246 = vperm.xlu2 %782, %v232_v17  }
  0x4e   :  { %386 = vperm.xlu1 %778, %v372_v18  }
  0x4f   :  { %391 = vperm.xlu2 %782, %v373_v19  }
  0x56   :  { %396 = vperm.xlu1 %778, %v374_v20  }
  0x57   :  { %590 = vperm.xlu2 %782, %v580_v21  }
  0x5d   :  { %v925_v26 = vpop.permute.xlu2 %60 }
  0x5e   :  { %401 = vperm.xlu1 %778, %v375_v22  }
  0x5f   :  { %600 = vperm.xlu2 %782, %v582_v23  }
  0x65   :  { %v933_v29 = vpop.permute.xlu2 %65 }
  0x66   :  { %605 = vperm.xlu1 %778, %v583_v24  }
  0x67   :  { %411 = vperm.xlu2 %782, %v377_v25  }
  0x6d   :  { %v272_v34 = vpop.permute.xlu2 %271 }
  0x6e   :  { %416 = vperm.xlu1 %778, %v378_v27  }
  0x6f   :  { %615 = vperm.xlu2 %782, %v585_v28  }
  0x74   :  { %v149_v31 = vpop.permute.xlu1 %148 }
  0x75   :  { %v71_v32 = vpop.permute.xlu0 %70  ;;  %v191_v53 = vmul.f32 %v941_v45, %v149_v31  ;;  %v192_v54 = vmul.f32 %v943_v46, %v149_v31  ;;  %v193_v55 = vmul.f32 %v945_v47, %v149_v31  ;;  %v194_v56 = vmul.f32 %v947_v48, %v149_v31  ;;  %v965_v61 = vpop.permute.xlu2 %50 }
  0x76   :  { %625 = vperm.xlu1 %778, %v587_v30   ;;  %v115_v57 = vmul.f32 %v949_v49, %v71_v32  ;;  %v116_v58 = vmul.f32 %v951_v50, %v71_v32  ;;  %v117_v59 = vmul.f32 %v953_v51, %v71_v32  ;;  %v118_v60 = vmul.f32 %v955_v52, %v71_v32 }
  0x78   :  { %v223_v0 = vadd.f32 %v191_v53, %v115_v57  ;;  %v224_v1 = vadd.f32 %v192_v54, %v116_v58  ;;  %v225_v2 = vadd.f32 %v193_v55, %v117_v59  ;;  %v226_v3 = vadd.f32 %v194_v56, %v118_v60 }
  0x79   :  { %v111_v55 = vmul.f32 %v949_v49, %v933_v29  ;;  %v112_v56 = vmul.f32 %v951_v50, %v933_v29  ;;  %v113_v57 = vmul.f32 %v953_v51, %v933_v29  ;;  %v114_v58 = vmul.f32 %v955_v52, %v933_v29 }
  0x7a   :  { %v303_v13 = vadd.f32 %v272_v34, %v223_v0  ;;  %v304_v14 = vadd.f32 %v272_v34, %v224_v1  ;;  %v305_v15 = vadd.f32 %v272_v34, %v225_v2  ;;  %v306_v16 = vadd.f32 %v272_v34, %v226_v3 }
  0x7b   :  { %v109_v29 = vmul.f32 %v953_v51, %v925_v26 }
  0x7c   :  { %v153_v43 = vpop.permute.xlu1 %152  ;;  %v335_v28 = vmax.f32 %v303_v13, 0.0  ;;  %v336_v30 = vmax.f32 %v304_v14, 0.0  ;;  %v337_v31 = vmax.f32 %v305_v15, 0.0  ;;  %v338_v32 = vmax.f32 %v306_v16, 0.0 }
  0x7d   :  { %v76_v44 = vpop.permute.xlu0 %75  ;;  %v195_v4 = vmul.f32 %v941_v45, %v153_v43  ;;  %v196_v5 = vmul.f32 %v943_v46, %v153_v43  ;;  %v197_v6 = vmul.f32 %v945_v47, %v153_v43  ;;  %v198_v7 = vmul.f32 %v947_v48, %v153_v43 }
  0x7e   :  { %v119_v8 = vmul.f32 %v949_v49, %v76_v44  ;;  %v120_v9 = vmul.f32 %v951_v50, %v76_v44  ;;  %v121_v10 = vmul.f32 %v953_v51, %v76_v44  ;;  %v122_v11 = vmul.f32 %v955_v52, %v76_v44  ;;  %v977_v12 = vpop.permute.xlu2 %136 }
  0x80   :  { %v227_v17 = vadd.f32 %v195_v4, %v119_v8  ;;  %v228_v18 = vadd.f32 %v196_v5, %v120_v9  ;;  %v229_v19 = vadd.f32 %v197_v6, %v121_v10  ;;  %v230_v20 = vadd.f32 %v198_v7, %v122_v11 }
  0x81   :  { %v107_v6 = vmul.f32 %v949_v49, %v925_v26  ;;  %v108_v7 = vmul.f32 %v951_v50, %v925_v26  ;;  %v110_v8 = vmul.f32 %v955_v52, %v925_v26  ;;  %v182_v26 = vmul.f32 %v947_v48, %v977_v12 }
  0x84   :  { %v145_v62 = vpop.permute.xlu1 %144 }
  0x85   :  { %v967_v63 = vpop.permute.xlu0 %55  ;;  %v187_v41 = vmul.f32 %v941_v45, %v145_v62  ;;  %v188_v43 = vmul.f32 %v943_v46, %v145_v62  ;;  %v189_v44 = vmul.f32 %v945_v47, %v145_v62  ;;  %v190_v53 = vmul.f32 %v947_v48, %v145_v62 }
  0x87   :  { %v267_v42 = vpop.permute.xlu2 %266  ;;  %v219_v60 = vadd.f32 %v187_v41, %v111_v55  ;;  %v220_v62 = vadd.f32 %v188_v43, %v112_v56  ;;  %v221_v0 = vadd.f32 %v189_v44, %v113_v57  ;;  %v222_v1 = vadd.f32 %v190_v53, %v114_v58 }
  0x88   :  { %v99_v53 = vmul.f32 %v949_v49, %v965_v61  ;;  %v100_v55 = vmul.f32 %v951_v50, %v965_v61  ;;  %v101_v56 = vmul.f32 %v953_v51, %v965_v61  ;;  %v102_v57 = vmul.f32 %v955_v52, %v965_v61 }
  0x89   :  { %v299_v9 = vadd.f32 %v267_v42, %v219_v60  ;;  %v300_v10 = vadd.f32 %v267_v42, %v220_v62  ;;  %v301_v11 = vadd.f32 %v267_v42, %v221_v0  ;;  %v302_v13 = vadd.f32 %v267_v42, %v222_v1 }
  0x8d   :  { %v979_v21 = vpop.permute.xlu0 %40 }
  0x8e   :  { %v277_v22 = vpop.permute.xlu1 %276 }
  0x8f   :  { %v307_v23 = vadd.f32 %v277_v22, %v227_v17  ;;  %v308_v24 = vadd.f32 %v277_v22, %v228_v18  ;;  %v309_v25 = vadd.f32 %v277_v22, %v229_v19  ;;  %v310_v27 = vadd.f32 %v277_v22, %v230_v20 }
  0x90   :  { %v125_v14 = vpop.permute.xlu2 %124  ;;  %v179_v19 = vmul.f32 %v941_v45, %v977_v12  ;;  %v180_v20 = vmul.f32 %v943_v46, %v977_v12  ;;  %v181_v22 = vmul.f32 %v945_v47, %v977_v12  ;;  %v105_v12 = vmul.f32 %v953_v51, %v967_v63 }
  0x91   :  { %v339_v33 = vmax.f32 %v307_v23, 0.0  ;;  %v340_v35 = vmax.f32 %v308_v24, 0.0  ;;  %v341_v36 = vmax.f32 %v309_v25, 0.0  ;;  %v342_v37 = vmax.f32 %v310_v27, 0.0 }
  0x92   :  { %v213_v0 = vadd.f32 %v181_v22, %v105_v12  ;;  %v169_v61 = vmul.f32 %v945_v47, %v125_v14  ;;  %v581_v12 = vld [vmem:[%s1161_s5 + $0x8] sm:$0xff] }
  0x93   :  { %v367_v34 = vpack.c.bf16 %v339_v33, %v335_v28  ;;  %v368_v38 = vpack.c.bf16 %v340_v35, %v336_v30  ;;  %v369_v39 = vpack.c.bf16 %v341_v36, %v337_v31  ;;  %v370_v40 = vpack.c.bf16 %v342_v37, %v338_v32 }
  0x94   :  { %v331_v30 = vmax.f32 %v299_v9, 0.0  ;;  %v332_v31 = vmax.f32 %v300_v10, 0.0  ;;  %v333_v32 = vmax.f32 %v301_v11, 0.0  ;;  %v334_v33 = vmax.f32 %v302_v13, 0.0 }
  0x95   :  { %436 = vmatpush.bf16.msra.mxu0 %v367_v34  ;;  %465 = vmatpush.bf16.msra.mxu1 %v368_v38  ;;  %v103_v38 = vmul.f32 %v949_v49, %v967_v63 }
  0x96   :  { %494 = vmatpush.bf16.msra.mxu2 %v369_v39  ;;  %523 = vmatpush.bf16.msra.mxu3 %v370_v40  ;;  %v104_v39 = vmul.f32 %v951_v50, %v967_v63  ;;  %v106_v40 = vmul.f32 %v955_v52, %v967_v63 }
  0x97   :  { %v985_v54 = vpop.permute.xlu1 %132  ;;  %v141_v59 = vpop.permute.xlu0 %140  ;;  %v211_v58 = vadd.f32 %v179_v19, %v103_v38 }
  0x98   :  { %v183_v2 = vmul.f32 %v941_v45, %v141_v59  ;;  %v184_v3 = vmul.f32 %v943_v46, %v141_v59  ;;  %v185_v4 = vmul.f32 %v945_v47, %v141_v59  ;;  %v186_v5 = vmul.f32 %v947_v48, %v141_v59 }
  0x99   :  { %v91_v59 = vmul.f32 %v949_v49, %v979_v21  ;;  %v257_v60 = vpop.permute.xlu2 %256  ;;  %v212_v62 = vadd.f32 %v180_v20, %v104_v39  ;;  %v214_v1 = vadd.f32 %v182_v26, %v106_v40  ;;  %v178_v9 = vmul.f32 %v947_v48, %v985_v54 }
  0x9a   :  { %v215_v15 = vadd.f32 %v183_v2, %v107_v6  ;;  %v216_v16 = vadd.f32 %v184_v3, %v108_v7  ;;  %v217_v17 = vadd.f32 %v185_v4, %v109_v29  ;;  %v218_v18 = vadd.f32 %v186_v5, %v110_v8  ;;  %v371_v2 = vld [vmem:[%s1160_s4] sm:$0xff] }
  0x9b   :  { %v167_v3 = vmul.f32 %v941_v45, %v125_v14  ;;  %v168_v4 = vmul.f32 %v943_v46, %v125_v14  ;;  %v170_v5 = vmul.f32 %v947_v48, %v125_v14  ;;  %381 = vperm.xlu0 %783, %v371_v2   ;;  %v175_v7 = vmul.f32 %v941_v45, %v985_v54 }
  0x9c   :  { %v176_v29 = vmul.f32 %v943_v46, %v985_v54  ;;  %v177_v8 = vmul.f32 %v945_v47, %v985_v54  ;;  %v291_v10 = vadd.f32 %v257_v60, %v211_v58  ;;  %v292_v11 = vadd.f32 %v257_v60, %v212_v62 }
  0x9d   :  { %v293_v13 = vadd.f32 %v257_v60, %v213_v0  ;;  %v207_v26 = vadd.f32 %v175_v7, %v99_v53  ;;  %v92_v40 = vmul.f32 %v951_v50, %v979_v21 }
  0xa0   :  { %v262_v23 = vpop.permute.xlu1 %261  ;;  %v129_v6 = vpop.permute.xlu0 %128 }
  0xa1   :  { %v295_v24 = vadd.f32 %v262_v23, %v215_v15  ;;  %v296_v25 = vadd.f32 %v262_v23, %v216_v16  ;;  %v297_v27 = vadd.f32 %v262_v23, %v217_v17  ;;  %v298_v28 = vadd.f32 %v262_v23, %v218_v18 }
  0xa2   :  { %v294_v15 = vadd.f32 %v257_v60, %v214_v1  ;;  %v171_v14 = vmul.f32 %v941_v45, %v129_v6  ;;  %v172_v16 = vmul.f32 %v943_v46, %v129_v6  ;;  %v173_v17 = vmul.f32 %v945_v47, %v129_v6 }
  0xa3   :  { %v327_v35 = vmax.f32 %v295_v24, 0.0  ;;  %v328_v36 = vmax.f32 %v296_v25, 0.0  ;;  %v329_v37 = vmax.f32 %v297_v27, 0.0  ;;  %v330_v34 = vmax.f32 %v298_v28, 0.0  ;;  %595 = vperm.xlu0 %783, %v581_v12  }
  0xa4   :  { %v174_v18 = vmul.f32 %v947_v48, %v129_v6  ;;  %v208_v23 = vadd.f32 %v176_v29, %v100_v55  ;;  %v209_v24 = vadd.f32 %v177_v8, %v101_v56  ;;  %v210_v25 = vadd.f32 %v178_v9, %v102_v57 }
  0xa5   :  { %v363_v41 = vpack.c.bf16 %v331_v30, %v327_v35  ;;  %v364_v42 = vpack.c.bf16 %v332_v31, %v328_v36  ;;  %v365_v43 = vpack.c.bf16 %v333_v32, %v329_v37  ;;  %v366_v44 = vpack.c.bf16 %v334_v33, %v330_v34 }
  0xa6   :  { %v323_v45 = vmax.f32 %v291_v10, 0.0  ;;  %v324_v28 = vmax.f32 %v292_v11, 0.0  ;;  %v325_v46 = vmax.f32 %v293_v13, 0.0  ;;  %v326_v30 = vmax.f32 %v294_v15, 0.0  ;;  %v344_v11 = vld [vmem:[%s1159_s3 + $0x8] sm:$0xff] }
  0xa7   :  { %437 = vmatpush.bf16.msra.mxu0 %v363_v41  ;;  %466 = vmatpush.bf16.msra.mxu1 %v364_v42  ;;  %v93_v41 = vmul.f32 %v953_v51, %v979_v21  ;;  %v94_v42 = vmul.f32 %v955_v52, %v979_v21 }
  0xa8   :  { %495 = vmatpush.bf16.msra.mxu2 %v365_v43  ;;  %524 = vmatpush.bf16.msra.mxu3 %v366_v44  ;;  %v46_v63 = vpop.permute.xlu1 %45  ;;  %v199_v43 = vadd.f32 %v167_v3, %v91_v59  ;;  %v247_v44 = vpop.permute.xlu2 %246  ;;  %v376_v3 = vld [vmem:[%s1160_s4 + $0x28] sm:$0xff] }
  0xa9   :  { %v95_v19 = vmul.f32 %v949_v49, %v46_v63  ;;  %v96_v20 = vmul.f32 %v951_v50, %v46_v63  ;;  %v97_v22 = vmul.f32 %v953_v51, %v46_v63  ;;  %v98_v54 = vmul.f32 %v955_v52, %v46_v63 }
  0xaa   :  { %v200_v50 = vadd.f32 %v168_v4, %v92_v40  ;;  %v201_v0 = vadd.f32 %v169_v61, %v93_v41  ;;  %v202_v1 = vadd.f32 %v170_v5, %v94_v42  ;;  %v343_v5 = vld [vmem:[%s1159_s3] sm:$0xff] }
  0xab   :  { %v203_v49 = vadd.f32 %v171_v14, %v95_v19  ;;  %v204_v33 = vadd.f32 %v172_v16, %v96_v20  ;;  %v205_v35 = vadd.f32 %v173_v17, %v97_v22  ;;  %v206_v36 = vadd.f32 %v174_v18, %v98_v54  ;;  %406 = vperm.xlu0 %783, %v376_v3   ;;  %v584_v18 = vld [vmem:[%s1161_s5 + $0x20] sm:$0xff]  ;;  %v586_v19 = vld [vmem:[%s1161_s5 + $0x30] sm:$0xff]  ;;  %v346_v22 = vld [vmem:[%s1159_s3 + $0x18] sm:$0xff] }
  0xac   :  { %v351_v17 = vpack.c.bf16 %v344_v11, %v343_v5  ;;  %v345_v20 = vld [vmem:[%s1159_s3 + $0x10] sm:$0xff] }
  0xad   :  { %v283_v63 = vadd.f32 %v247_v44, %v203_v49  ;;  %v284_v58 = vadd.f32 %v247_v44, %v204_v33  ;;  %v285_v60 = vadd.f32 %v247_v44, %v205_v35  ;;  %v286_v62 = vadd.f32 %v247_v44, %v206_v36 }
  0xae   :  { %v352_v54 = vpack.c.bf16 %v346_v22, %v345_v20 }
  0xaf   :  { %v315_v6 = vmax.f32 %v283_v63, 0.0  ;;  %v316_v7 = vmax.f32 %v284_v58, 0.0  ;;  %v317_v29 = vmax.f32 %v285_v60, 0.0  ;;  %v318_v8 = vmax.f32 %v286_v62, 0.0 }
  0xb0   :  { %v252_v27 = vpop.permute.xlu1 %251  ;;  %v392_v49 = vpop.permute.xlu2 %391 }
  0xb1   :  { %v287_v47 = vadd.f32 %v252_v27, %v207_v26  ;;  %v288_v31 = vadd.f32 %v252_v27, %v208_v23  ;;  %v289_v48 = vadd.f32 %v252_v27, %v209_v24  ;;  %v290_v32 = vadd.f32 %v252_v27, %v210_v25  ;;  %v347_v26 = vld [vmem:[%s1159_s3 + $0x20] sm:$0xff]  ;;  %v348_v23 = vld [vmem:[%s1159_s3 + $0x28] sm:$0xff]  ;;  %v349_v25 = vld [vmem:[%s1159_s3 + $0x30] sm:$0xff] }
  0xb2   :  { %v353_v24 = vpack.c.bf16 %v348_v23, %v347_v26  ;;  %v350_v27 = vld [vmem:[%s1159_s3 + $0x38] sm:$0xff] }
  0xb3   :  { %v319_v37 = vmax.f32 %v287_v47, 0.0  ;;  %v320_v34 = vmax.f32 %v288_v31, 0.0  ;;  %v321_v38 = vmax.f32 %v289_v48, 0.0  ;;  %v322_v39 = vmax.f32 %v290_v32, 0.0  ;;  %610 = vperm.xlu0 %783, %v584_v18  }
  0xb5   :  { %v359_v53 = vpack.c.bf16 %v323_v45, %v319_v37  ;;  %v360_v55 = vpack.c.bf16 %v324_v28, %v320_v34  ;;  %v361_v56 = vpack.c.bf16 %v325_v46, %v321_v38  ;;  %v362_v57 = vpack.c.bf16 %v326_v30, %v322_v39 }
  0xb6   :  { %v354_v45 = vpack.c.bf16 %v350_v27, %v349_v25 }
  0xb7   :  { %438 = vmatpush.bf16.msra.mxu0 %v359_v53  ;;  %467 = vmatpush.bf16.msra.mxu1 %v360_v55 }
  0xb8   :  { %496 = vmatpush.bf16.msra.mxu2 %v361_v56  ;;  %525 = vmatpush.bf16.msra.mxu3 %v362_v57  ;;  %v242_v51 = vpop.permute.xlu1 %241  ;;  %v591_v39 = vpop.permute.xlu2 %590 }
  0xb9   :  { %v279_v52 = vadd.f32 %v242_v51, %v199_v43  ;;  %v280_v21 = vadd.f32 %v242_v51, %v200_v50  ;;  %v281_v59 = vadd.f32 %v242_v51, %v201_v0  ;;  %v282_v2 = vadd.f32 %v242_v51, %v202_v1 }
  0xbb   :  { %v311_v9 = vmax.f32 %v279_v52, 0.0  ;;  %v312_v10 = vmax.f32 %v280_v21, 0.0  ;;  %v313_v4 = vmax.f32 %v281_v59, 0.0  ;;  %v314_v61 = vmax.f32 %v282_v2, 0.0  ;;  %620 = vperm.xlu0 %783, %v586_v19  }
  0xbd   :  { %v355_v13 = vpack.c.bf16 %v315_v6, %v311_v9  ;;  %v356_v15 = vpack.c.bf16 %v316_v7, %v312_v10  ;;  %v357_v14 = vpack.c.bf16 %v317_v29, %v313_v4  ;;  %v358_v16 = vpack.c.bf16 %v318_v8, %v314_v61 }
  0xbf   :  { %439 = vmatpush.bf16.msra.mxu0 %v355_v13  ;;  %468 = vmatpush.bf16.msra.mxu1 %v356_v15 }
  0xc0   :  { %497 = vmatpush.bf16.msra.mxu2 %v357_v14  ;;  %526 = vmatpush.bf16.msra.mxu3 %v358_v16  ;;  %v387_v30 = vpop.permute.xlu1 %386  ;;  %v601_v60 = vpop.permute.xlu2 %600 }
  0xc2   :  { %753 = vmatmul.msk.bf16.vlgmr.msra.gmra.mxu0 %vm419_vm0, %v351_v17  ;;  %757 = vmatmul.msk.bf16.vlgmr.msra.gmra.mxu1 %vm419_vm0, %v351_v17 }
  0xc3   :  { %761 = vmatmul.msk.bf16.vlgmr.msra.gmra.mxu2 %vm419_vm0, %v351_v17  ;;  %765 = vmatmul.msk.bf16.vlgmr.msra.gmra.mxu3 %vm419_vm0, %v351_v17 }
  0xc8   :  { %v1114_v38 = vpop.permute.xlu1 %396 }
  0xd0   :  { %v1116_v44 = vpop.permute.xlu1 %401 }
  0xd2   :  { %754 = vmatmul.msk.bf16.gmra.mxu0 %vm419_vm0, %v352_v54  ;;  %758 = vmatmul.msk.bf16.gmra.mxu1 %vm419_vm0, %v352_v54 }
  0xd3   :  { %762 = vmatmul.msk.bf16.gmra.mxu2 %vm419_vm0, %v352_v54  ;;  %766 = vmatmul.msk.bf16.gmra.mxu3 %vm419_vm0, %v352_v54 }
  0xd8   :  { %v1120_v3 = vpop.permute.xlu1 %605 }
  0xe2   :  { %755 = vmatmul.msk.bf16.gmra.mxu0 %vm419_vm0, %v353_v24  ;;  %759 = vmatmul.msk.bf16.gmra.mxu1 %vm419_vm0, %v353_v24 }
  0xe3   :  { %763 = vmatmul.msk.bf16.gmra.mxu2 %vm419_vm0, %v353_v24  ;;  %767 = vmatmul.msk.bf16.gmra.mxu3 %vm419_vm0, %v353_v24 }
  0xf2   :  { %756 = vmatmul.msk.bf16.gmra.mxu0 %vm419_vm0, %v354_v45  ;;  %760 = vmatmul.msk.bf16.gmra.mxu1 %vm419_vm0, %v354_v45 }
  0xf3   :  { %764 = vmatmul.msk.bf16.gmra.mxu2 %vm419_vm0, %v354_v45  ;;  %768 = vmatmul.msk.bf16.gmra.mxu3 %vm419_vm0, %v354_v45 }
 0x10d   :  { %v382_v33 = vpop.permute.xlu0 %381 }
 0x115   :  { %v596_v12 = vpop.permute.xlu0 %595 }
 0x11d   :  { %v1118_v0 = vpop.permute.xlu0 %406 }
 0x13f   :  { %v441_v28 = vpop.f32.mrf.mxu0  ;;  %v470_v46 = vpop.f32.mrf.mxu1 }
 0x140   :  { %v442_v1 = vadd.f32 %v441_v28, %v382_v33  ;;  %v471_v51 = vadd.f32 %v470_v46, %v382_v33  ;;  %v412_v28 = vpop.permute.xlu2 %411 }
 0x142   :  { %v548_v9 = vmax.f32 %v442_v1, 0.0  ;;  %v549_v10 = vmax.f32 %v471_v51, 0.0 }
 0x144   :  { %v628_v24 = vmul.f32 %v591_v39, %v548_v9  ;;  %v629_v25 = vmul.f32 %v591_v39, %v549_v10 }
 0x146   :  { %v499_v47 = vpop.f32.mrf.mxu2  ;;  %v528_v31 = vpop.f32.mrf.mxu3 }
 0x147   :  { %v443_v48 = vpop.f32.mrf.mxu0  ;;  %v472_v32 = vpop.f32.mrf.mxu1  ;;  %v500_v52 = vadd.f32 %v499_v47, %v382_v33  ;;  %v529_v21 = vadd.f32 %v528_v31, %v382_v33 }
 0x148   :  { %v444_v63 = vadd.f32 %v443_v48, %v387_v30  ;;  %v473_v58 = vadd.f32 %v472_v32, %v387_v30  ;;  %v1124_v47 = vpop.permute.xlu0 %610 }
 0x149   :  { %v550_v4 = vmax.f32 %v500_v52, 0.0  ;;  %v551_v61 = vmax.f32 %v529_v21, 0.0 }
 0x14a   :  { %v552_v59 = vmax.f32 %v444_v63, 0.0  ;;  %v553_v2 = vmax.f32 %v473_v58, 0.0 }
 0x14b   :  { %v630_v27 = vmul.f32 %v591_v39, %v550_v4  ;;  %v631_v45 = vmul.f32 %v591_v39, %v551_v61 }
 0x14c   :  { %v632_v17 = vmul.f32 %v596_v12, %v552_v59  ;;  %v633_v18 = vmul.f32 %v596_v12, %v553_v2  ;;  %v1134_v59 = vpop.permute.xlu1 %416 }
 0x14e   :  { %v501_v35 = vpop.f32.mrf.mxu2  ;;  %v530_v36 = vpop.f32.mrf.mxu3  ;;  %v660_v32 = vadd.f32 %v632_v17, %v628_v24 }
 0x14f   :  { %v446_v37 = vpop.f32.mrf.mxu0  ;;  %v475_v34 = vpop.f32.mrf.mxu1  ;;  %v502_v62 = vadd.f32 %v501_v35, %v387_v30  ;;  %v531_v50 = vadd.f32 %v530_v36, %v387_v30 }
 0x150   :  { %v447_v29 = vadd.f32 %v446_v37, %v392_v49  ;;  %v476_v8 = vadd.f32 %v475_v34, %v392_v49  ;;  %v616_v17 = vpop.permute.xlu2 %615 }
 0x151   :  { %v554_v6 = vmax.f32 %v502_v62, 0.0  ;;  %v555_v7 = vmax.f32 %v531_v50, 0.0 }
 0x152   :  { %v556_v26 = vmax.f32 %v447_v29, 0.0  ;;  %v557_v23 = vmax.f32 %v476_v8, 0.0 }
 0x153   :  { %v634_v22 = vmul.f32 %v596_v12, %v554_v6  ;;  %v635_v54 = vmul.f32 %v596_v12, %v555_v7 }
 0x154   :  { %v636_v34 = vmul.f32 %v601_v60, %v556_v26  ;;  %v637_v12 = vmul.f32 %v601_v60, %v557_v23 }
 0x155   :  { %v686_v36 = vadd.f32 %v634_v22, %v630_v27  ;;  %v699_v37 = vadd.f32 %v635_v54, %v631_v45 }
 0x156   :  { %v504_v40 = vpop.f32.mrf.mxu2  ;;  %v533_v41 = vpop.f32.mrf.mxu3 }
 0x157   :  { %v448_v42 = vpop.f32.mrf.mxu0  ;;  %v477_v43 = vpop.f32.mrf.mxu1  ;;  %v505_v13 = vadd.f32 %v504_v40, %v392_v49  ;;  %v534_v15 = vadd.f32 %v533_v41, %v392_v49  ;;  %v673_v49 = vadd.f32 %v633_v18, %v629_v25 }
 0x158   :  { %v449_v19 = vadd.f32 %v448_v42, %v1114_v38  ;;  %v478_v20 = vadd.f32 %v477_v43, %v1114_v38  ;;  %v621_v18 = vpop.permute.xlu0 %620 }
 0x159   :  { %v558_v46 = vmax.f32 %v505_v13, 0.0  ;;  %v559_v30 = vmax.f32 %v534_v15, 0.0 }
 0x15a   :  { %v560_v33 = vmax.f32 %v449_v19, 0.0  ;;  %v561_v35 = vmax.f32 %v478_v20, 0.0 }
 0x15b   :  { %v638_v63 = vmul.f32 %v601_v60, %v558_v46 }
 0x15c   :  { %v640_v51 = vmul.f32 %v1120_v3, %v560_v33  ;;  %v641_v52 = vmul.f32 %v1120_v3, %v561_v35 }
 0x15d   :  { %v687_v9 = vadd.f32 %v686_v36, %v638_v63 }
 0x15e   :  { %v506_v53 = vpop.f32.mrf.mxu2  ;;  %v535_v55 = vpop.f32.mrf.mxu3 }
 0x15f   :  { %v451_v56 = vpop.f32.mrf.mxu0  ;;  %v480_v57 = vpop.f32.mrf.mxu1  ;;  %v507_v40 = vadd.f32 %v506_v53, %v1114_v38  ;;  %v536_v39 = vadd.f32 %v535_v55, %v1114_v38  ;;  %v661_v38 = vadd.f32 %v660_v32, %v636_v34  ;;  %v674_v55 = vadd.f32 %v673_v49, %v637_v12 }
 0x160   :  { %v452_v31 = vadd.f32 %v451_v56, %v1116_v44  ;;  %v481_v48 = vadd.f32 %v480_v57, %v1116_v44  ;;  %v639_v57 = vmul.f32 %v601_v60, %v559_v30 }
 0x161   :  { %v562_v7 = vmax.f32 %v507_v40, 0.0  ;;  %v563_v60 = vmax.f32 %v536_v39, 0.0  ;;  %v662_v13 = vadd.f32 %v661_v38, %v640_v51  ;;  %v675_v15 = vadd.f32 %v674_v55, %v641_v52  ;;  %v626_v39 = vpop.permute.xlu1 %625 }
 0x162   :  { %v564_v58 = vmax.f32 %v452_v31, 0.0  ;;  %v565_v62 = vmax.f32 %v481_v48, 0.0  ;;  %v700_v10 = vadd.f32 %v699_v37, %v639_v57 }
 0x163   :  { %v642_v20 = vmul.f32 %v1120_v3, %v562_v7  ;;  %v643_v22 = vmul.f32 %v1120_v3, %v563_v60 }
 0x164   :  { %v644_v4 = vmul.f32 %v1124_v47, %v564_v58  ;;  %v645_v61 = vmul.f32 %v1124_v47, %v565_v62 }
 0x166   :  { %v509_v5 = vpop.f32.mrf.mxu2  ;;  %v538_v11 = vpop.f32.mrf.mxu3  ;;  %v663_v25 = vadd.f32 %v662_v13, %v644_v4  ;;  %v676_v27 = vadd.f32 %v675_v15, %v645_v61 }
 0x167   :  { %v453_v14 = vpop.f32.mrf.mxu0  ;;  %v482_v16 = vpop.f32.mrf.mxu1  ;;  %v510_v2 = vadd.f32 %v509_v5, %v1116_v44  ;;  %v539_v6 = vadd.f32 %v538_v11, %v1116_v44 }
 0x168   :  { %v454_v41 = vadd.f32 %v453_v14, %v1118_v0  ;;  %v483_v42 = vadd.f32 %v482_v16, %v1118_v0 }
 0x169   :  { %v566_v19 = vmax.f32 %v510_v2, 0.0  ;;  %v567_v5 = vmax.f32 %v539_v6, 0.0 }
 0x16a   :  { %v568_v29 = vmax.f32 %v454_v41, 0.0  ;;  %v569_v8 = vmax.f32 %v483_v42, 0.0  ;;  %v701_v41 = vadd.f32 %v700_v10, %v643_v22 }
 0x16b   :  { %v646_v33 = vmul.f32 %v1124_v47, %v566_v19  ;;  %v647_v3 = vmul.f32 %v1124_v47, %v567_v5 }
 0x16c   :  { %v648_v54 = vmul.f32 %v616_v17, %v568_v29  ;;  %v649_v26 = vmul.f32 %v616_v17, %v569_v8 }
 0x16d   :  { %v702_v51 = vadd.f32 %v701_v41, %v647_v3  ;;  %v732_v3 = vlaneseq }
 0x16e   :  { %v511_v43 = vpop.f32.mrf.mxu2  ;;  %v540_v56 = vpop.f32.mrf.mxu3  ;;  %v664_v37 = vadd.f32 %v663_v25, %v648_v54  ;;  %v677_v34 = vadd.f32 %v676_v27, %v649_v26  ;;  %v713_v27 = vstv %s1162_s6  ;;  %s744_s6 = sshll.u32 %s1163_s7, 4  ;;  %s745_s6 = int_to_ptr.hbm [resolvable:$true] %s744_s6 }
 0x16f   :  { %v456_v50 = vpop.f32.mrf.mxu0  ;;  %v485_v1 = vpop.f32.mrf.mxu1  ;;  %v512_v44 = vadd.f32 %v511_v43, %v1118_v0  ;;  %v541_v11 = vadd.f32 %v540_v56, %v1118_v0  ;;  %vm734_vm4 = vcmp.lt.s32.totalorder %v732_v3, 512 }
 0x170   :  { %v457_v21 = vadd.f32 %v456_v50, %v412_v28  ;;  %v486_v53 = vadd.f32 %v485_v1, %v412_v28 }
 0x171   :  { %v570_v35 = vmax.f32 %v512_v44, 0.0  ;;  %v571_v36 = vmax.f32 %v541_v11, 0.0 }
 0x172   :  { %v572_v14 = vmax.f32 %v457_v21, 0.0  ;;  %v573_v16 = vmax.f32 %v486_v53, 0.0 }
 0x173   :  { %v650_v62 = vmul.f32 %v616_v17, %v570_v35  ;;  %v651_v50 = vmul.f32 %v616_v17, %v571_v36 }
 0x174   :  { %v652_v48 = vmul.f32 %v621_v18, %v572_v14  ;;  %v653_v32 = vmul.f32 %v621_v18, %v573_v16 }
 0x175   :  { %v703_v8 = vadd.f32 %v702_v51, %v651_v50 }
 0x176   :  { %v514_v23 = vpop.f32.mrf.mxu2  ;;  %v543_v24 = vpop.f32.mrf.mxu3  ;;  %v665_v56 = vadd.f32 %v664_v37, %v652_v48  ;;  %v678_v63 = vadd.f32 %v677_v34, %v653_v32 }
 0x177   :  { %v515_v45 = vadd.f32 %v514_v23, %v412_v28  ;;  %v544_v46 = vadd.f32 %v543_v24, %v412_v28  ;;  %v458_v30 = vpop.f32.mrf.mxu0  ;;  %v487_v31 = vpop.f32.mrf.mxu1  ;;  %v688_v28 = vadd.f32 %v687_v9, %v642_v20 }
 0x178   :  { %v459_v49 = vadd.f32 %v458_v30, %v1134_v59  ;;  %v488_v0 = vadd.f32 %v487_v31, %v1134_v59 }
 0x179   :  { %v574_v42 = vmax.f32 %v515_v45, 0.0  ;;  %v575_v43 = vmax.f32 %v544_v46, 0.0  ;;  %v689_v1 = vadd.f32 %v688_v28, %v646_v33 }
 0x17a   :  { %v576_v12 = vmax.f32 %v459_v49, 0.0  ;;  %v577_v40 = vmax.f32 %v488_v0, 0.0 }
 0x17b   :  { %v654_v38 = vmul.f32 %v621_v18, %v574_v42  ;;  %v655_v55 = vmul.f32 %v621_v18, %v575_v43  ;;  %v690_v29 = vadd.f32 %v689_v1, %v650_v62 }
 0x17c   :  { %v656_v57 = vmul.f32 %v626_v39, %v576_v12  ;;  %v657_v58 = vmul.f32 %v626_v39, %v577_v40 }
 0x17d   :  { %v691_v13 = vadd.f32 %v690_v29, %v654_v38  ;;  %v704_v15 = vadd.f32 %v703_v8, %v655_v55 }
 0x17e   :  { %v666_v47 = vadd.f32 %v665_v56, %v656_v57  ;;  %v679_v52 = vadd.f32 %v678_v63, %v657_v58  ;;  %v516_v21 = vpop.f32.mrf.mxu2  ;;  %v545_v53 = vpop.f32.mrf.mxu3 }
 0x17f   :  { %v517_v2 = vadd.f32 %v516_v21, %v1134_v59  ;;  %v546_v6 = vadd.f32 %v545_v53, %v1134_v59 }
 0x180   :  { %v667_v7 = vrot.slane %v666_v47, 4  ;;  %v680_v60 = vrot.slane %v679_v52, 4 }
 0x181   :  { %v578_v9 = vmax.f32 %v517_v2, 0.0  ;;  %v579_v10 = vmax.f32 %v546_v6, 0.0 }
 0x182   :  { %v668_v4 = vadd.f32 %v667_v7, %v666_v47  ;;  %v681_v61 = vadd.f32 %v680_v60, %v679_v52 }
 0x183   :  { %v658_v14 = vmul.f32 %v626_v39, %v578_v9  ;;  %v659_v16 = vmul.f32 %v626_v39, %v579_v10 }
 0x184   :  { %v682_v17 = vrot.slane %v681_v61, 2  ;;  %v669_v19 = vrot.slane %v668_v4, 2 }
 0x185   :  { %v692_v5 = vadd.f32 %v691_v13, %v658_v14  ;;  %v705_v18 = vadd.f32 %v704_v15, %v659_v16 }
 0x186   :  { %v683_v44 = vadd.f32 %v682_v17, %v681_v61  ;;  %v670_v22 = vadd.f32 %v669_v19, %v668_v4 }
 0x187   :  { %v693_v11 = vrot.slane %v692_v5, 4  ;;  %v706_v20 = vrot.slane %v705_v18, 4 }
 0x188   :  { %v684_v59 = vrot.slane %v683_v44, 1  ;;  %v671_v45 = vrot.slane %v670_v22, 1 }
 0x189   :  { %v694_v54 = vadd.f32 %v693_v11, %v692_v5  ;;  %v707_v26 = vadd.f32 %v706_v20, %v705_v18 }
 0x18a   :  { %v685_v23 = vadd.f32 %v684_v59, %v683_v44  ;;  %v672_v49 = vadd.f32 %v671_v45, %v670_v22 }
 0x18b   :  { %v695_v24 = vrot.slane %v694_v54, 2  ;;  %v708_v25 = vrot.slane %v707_v26, 2 }
 0x18c   :  { %v715_v32 = vadd.f32 %v713_v27, %v685_v23  ;;  %v714_v34 = vadd.f32 %v713_v27, %v672_v49 }
 0x18d   :  { %v696_v46 = vadd.f32 %v695_v24, %v694_v54  ;;  %v709_v30 = vadd.f32 %v708_v25, %v707_v26 }
 0x18e   :  { %v722_v37 = vrot.slane %v715_v32, 7 }
 0x18f   :  { %v697_v31 = vrot.slane %v696_v46, 1  ;;  %v710_v48 = vrot.slane %v709_v30, 1 }
 0x190   :  { %v726_v39 = vsel %vm725_vm1, %v714_v34, %v722_v37 }
 0x191   :  { %v698_v0 = vadd.f32 %v697_v31, %v696_v46  ;;  %v711_v33 = vadd.f32 %v710_v48, %v709_v30 }
 0x193   :  { %v716_v35 = vadd.f32 %v713_v27, %v698_v0  ;;  %v717_v36 = vadd.f32 %v713_v27, %v711_v33 }
 0x195   :  { %v723_v12 = vrot.slane %v716_v35, 6  ;;  %v724_v40 = vrot.slane %v717_v36, 5 }
 0x197   :  { %v728_v28 = vsel %vm727_vm2, %v723_v12, %v724_v40 }
 0x198   :  { %v730_v41 = vsel %vm729_vm3, %v726_v39, %v728_v28 }
 0x199   :  { %736 = vst.msk [vmem:[#allocation3] sm:$0xf] %vm734_vm4, %v730_v41 }
 0x19a   :  { %747 = dma.vmem_to_hbm [thread:$0]  %s743_s0, 64, %s745_s6, [#allocation4]  }
 0x19b   :  { %808 = dma.done.wait [#allocation4], 64  }
 0x19c   :  { %809 = vsyncadd [#allocation4], 4294967232 }
 0x19d   :  { %752 = vsyncpa [#allocation4], 1 }

</bundles_post_ra>
